<compile_context>
chip_gen: v7x
topology: tpu7x:2x2x1
jax: 0.10.0
libtpu: 0.0.40
codegen_flags: <defaults>
</compile_context>

<pallas_src>
import functools
import math

import jax
import jax.numpy as jnp
from jax.experimental import pallas as pl
from jax.experimental.pallas import tpu as pltpu


HIDDEN1 = 512
HIDDEN2 = 256
MAX_TB = 1024          # one batch tile for typical batches -> w1 streamed once


def _round_up(x, m):
    return ((x + m - 1) // m) * m


def _leaky_relu(x, slope=0.2):
    return jnp.where(x >= 0, x, slope * x)


@functools.lru_cache(maxsize=1)
def _vmem_capacity_bytes():
    """Physical VMEM of the attached TPU generation (conservative fallback)."""
    try:
        return int(pltpu.get_tpu_info().vmem_capacity_bytes)
    except Exception:
        return 64 << 20   # assume v7x-sized VMEM if the query is unavailable


def _choose_tk(k128, max_tk):
    """Largest multiple of 128 that divides k128 and is <= max_tk.

    Falls back to a padded tail tile only if the exact divisor would explode
    the number of grid steps (rare, e.g. prime K/128)."""
    n = k128 // 128
    nmax = max(1, min(max_tk // 128, n))
    best = 1
    for d in range(1, nmax + 1):
        if n % d == 0:
            best = d
    tk = best * 128
    min_steps = (k128 + max_tk - 1) // max_tk
    if (k128 // tk) > 4 * min_steps:          # exact divisor is uselessly small
        tk = nmax * 128
        return tk, _round_up(k128, tk)
    return tk, k128


# ---------------------------------------------------------------------------
# Kernel: grid = (batch_tiles, k_tiles); k is the innermost (reduction) axis.
# ---------------------------------------------------------------------------
def _discriminator_kernel(x_ref, w1_ref, b1_ref, w2_ref, b2_ref, w3_ref,
                          b3_ref, out_ref, acc_ref):
    k = pl.program_id(1)

    @pl.when(k == 0)
    def _init():
        acc_ref[...] = jnp.zeros_like(acc_ref)

    # Layer-1 partial product for this K tile (MXU, fp32 accumulation).
    # x and w1 are streamed in the same (possibly bf16) dtype.
    acc_ref[...] += jnp.dot(x_ref[...].astype(w1_ref.dtype), w1_ref[...],
                            preferred_element_type=jnp.float32)

    @pl.when(k == pl.num_programs(1) - 1)
    def _epilogue():
        h = _leaky_relu(acc_ref[...] + b1_ref[...])                      # (TB, 512)
        h = _leaky_relu(
            jnp.dot(h, w2_ref[...], preferred_element_type=jnp.float32)
            + b2_ref[...])                                               # (TB, 256)
        logits = jnp.dot(h, w3_ref[...],
                         preferred_element_type=jnp.float32) + b3_ref[...]
        out_ref[...] = 1.0 / (1.0 + jnp.exp(-logits))                    # (TB, 128)


# ---------------------------------------------------------------------------
# One-time parameter packing (outside jit): exact-divisor TK selection,
# optional K padding for w1, bf16 cast of the streamed weight, lane padding
# (to 128) for w3/b3, biases reshaped to (1, N).
# ---------------------------------------------------------------------------
def pack_params(params, max_tk=None, stream_dtype=jnp.bfloat16):
    w1, b1, w2, b2, w3, b3 = [jnp.asarray(p, jnp.float32) for p in params]
    K, h1 = w1.shape
    n_out = w3.shape[1]

    if max_tk is None:
        # Bigger K tiles on 128 MiB-VMEM parts (v5e/v6e); tighter on v7x.
        max_tk = 5376 if _vmem_capacity_bytes() >= (96 << 20) else 2688
    max_tk = max(128, _round_up(max_tk, 128))

    k128 = _round_up(K, 128)
    tk, k_pad = _choose_tk(k128, max_tk)
    if k_pad != K:
        w1 = jnp.zeros((k_pad, h1), jnp.float32).at[:K].set(w1)
    w1 = w1.astype(stream_dtype)   # only the streamed weight is narrowed

    n_pad = max(128, _round_up(n_out, 128))
    w3p = jnp.zeros((w3.shape[0], n_pad), jnp.float32).at[:, :n_out].set(w3)
    b3p = jnp.zeros((1, n_pad), jnp.float32).at[:, :n_out].set(b3.reshape(1, -1))

    arrays = (w1, b1.reshape(1, -1), w2, b2.reshape(1, -1), w3p, b3p)
    return arrays, int(tk), int(n_out)


# ---------------------------------------------------------------------------
# Forward pass.
# ---------------------------------------------------------------------------
@functools.partial(jax.jit, static_argnames=("tk", "n_out"))
def _discriminator_forward(img, w1, b1, w2, b2, w3, b3, *, tk, n_out):
    B = img.shape[0]
    K = math.prod(img.shape[1:])
    k_pad, h1 = w1.shape
    h2 = w2.shape[1]
    n_pad = w3.shape[1]
    assert k_pad >= K and k_pad % tk == 0

    x_itemsize = jnp.dtype(w1.dtype).itemsize   # x streamed in w1's dtype

    # Batch tiling: one tile covering the whole batch whenever it fits.
    b8 = max(8, _round_up(B, 8))
    tb = min(MAX_TB, b8)

    # Generation-aware VMEM budget (v7x: 64 MiB physical; v5e/v6e: 128 MiB).
    vmem_cap = _vmem_capacity_bytes()
    vmem_budget = max(vmem_cap - (8 << 20), 16 << 20)

    def vmem_needed(tb_):
        streamed = 2 * tb_ * tk * x_itemsize + 2 * tk * h1 * x_itemsize
        resident = 2 * (h1 + h1 * h2 + h2 + h2 * n_pad + n_pad) * 4
        out_buf = 2 * tb_ * n_pad * 4
        acc = tb_ * h1 * 4
        return streamed + resident + out_buf + acc

    while vmem_needed(tb) + (2 << 20) > vmem_budget and tb > 8:
        tb = max(8, _round_up(tb // 2, 8))
    b_pad = _round_up(b8, tb)

    # Flatten exactly like img.view(B, -1) (row-major NCHW), cast to the
    # streamed dtype.  Only materialize a padded copy when genuinely ragged.
    x = img.reshape(B, K).astype(w1.dtype)
    if b_pad != B or k_pad != K:
        xp = jnp.zeros((b_pad, k_pad), w1.dtype).at[:B, :K].set(x)
    else:
        xp = x

    nb, nk = b_pad // tb, k_pad // tk
    grid = (nb, nk)

    in_specs = [
        pl.BlockSpec((tb, tk), lambda b, k: (b, k)),    # x       (streamed)
        pl.BlockSpec((tk, h1), lambda b, k: (k, 0)),    # w1      (streamed)
        pl.BlockSpec((1, h1), lambda b, k: (0, 0)),     # b1      (resident)
        pl.BlockSpec((h1, h2), lambda b, k: (0, 0)),    # w2      (resident)
        pl.BlockSpec((1, h2), lambda b, k: (0, 0)),     # b2      (resident)
        pl.BlockSpec((h2, n_pad), lambda b, k: (0, 0)), # w3 pad  (resident)
        pl.BlockSpec((1, n_pad), lambda b, k: (0, 0)),  # b3 pad  (resident)
    ]
    out_spec = pl.BlockSpec((tb, n_pad), lambda b, k: (b, 0))

    vmem_limit = int(min(vmem_needed(tb) + (4 << 20), vmem_budget))

    flops = 2 * b_pad * (k_pad * h1 + h1 * h2 + h2 * n_pad)
    bytes_accessed = (b_pad * k_pad * x_itemsize
                      + nb * k_pad * h1 * x_itemsize
                      + (h1 + h1 * h2 + h2 + h2 * n_pad + n_pad) * 4
                      + b_pad * n_pad * 4)
    cost = pl.CostEstimate(flops=flops,
                           transcendentals=b_pad * n_pad,
                           bytes_accessed=bytes_accessed)

    out = pl.pallas_call(
        _discriminator_kernel,
        out_shape=jax.ShapeDtypeStruct((b_pad, n_pad), jnp.float32),
        grid_spec=pltpu.PrefetchScalarGridSpec(
            num_scalar_prefetch=0,
            grid=grid,
            in_specs=in_specs,
            out_specs=out_spec,
            scratch_shapes=[pltpu.VMEM((tb, h1), jnp.float32)],
        ),
        compiler_params=pltpu.CompilerParams(
            # nb is 1 for typical batches, so no batch-splitting across the
            # v7x TensorCores (that would duplicate the w1 HBM stream).
            dimension_semantics=("parallel", "arbitrary"),
            vmem_limit_bytes=vmem_limit,
        ),
        cost_estimate=cost,
    )(xp, w1, b1, w2, b2, w3, b3)

    return out[:B, :n_out]


def discriminator_forward(img, packed):
    """img: (B, C, H, W) float32 -> validity: (B, 1) float32."""
    arrays, tk, n_out = packed
    return _discriminator_forward(img, *arrays, tk=tk, n_out=n_out)


# ---------------------------------------------------------------------------
# Parameters + pure-JAX references.
# ---------------------------------------------------------------------------
def init_params(key, in_features, hidden1=HIDDEN1, hidden2=HIDDEN2,
                out_features=1):
    """Deterministic synthetic parameters (PyTorch Linear-style uniform init).
    Weights stored as (in_features, out_features) for x @ W."""
    ks = jax.random.split(key, 6)

    def uniform(k, shape, fan_in):
        bound = 1.0 / jnp.sqrt(float(fan_in))
        return jax.random.uniform(k, shape, jnp.float32, -bound, bound)

    w1 = uniform(ks[0], (in_features, hidden1), in_features)
    b1 = uniform(ks[1], (1, hidden1), in_features)
    w2 = uniform(ks[2], (hidden1, hidden2), hidden1)
    b2 = uniform(ks[3], (1, hidden2), hidden1)
    w3 = uniform(ks[4], (hidden2, out_features), hidden2)
    b3 = uniform(ks[5], (1, out_features), hidden2)
    return (w1, b1, w2, b2, w3, b3)


def reference_forward(img, params):
    """Pure-JAX fp32 reference identical to the PyTorch forward."""
    w1, b1, w2, b2, w3, b3 = params
    x = img.reshape(img.shape[0], -1)
    h = _leaky_relu(x @ w1 + b1)
    h = _leaky_relu(h @ w2 + b2)
    return 1.0 / (1.0 + jnp.exp(-(h @ w3 + b3)))


def reference_forward_streamed(img, params, stream_dtype):
    """Reference that mirrors the kernel's dtype plan (layer-1 operands cast
    to the streamed dtype, fp32 accumulation, small layers fp32)."""
    w1, b1, w2, b2, w3, b3 = params
    x = img.reshape(img.shape[0], -1).astype(stream_dtype)
    h = jnp.dot(x, w1.astype(stream_dtype),
                preferred_element_type=jnp.float32) + b1
    h = _leaky_relu(h)
    h = _leaky_relu(jnp.dot(h, w2, preferred_element_type=jnp.float32) + b2)
    logits = jnp.dot(h, w3, preferred_element_type=jnp.float32) + b3
    return 1.0 / (1.0 + jnp.exp(-logits))


if __name__ == "__main__":
    # Small shapes consistent with the module: NCHW image, channels=3.
    # (Real module: img_size=112 -> K=37632; we use 16 to keep the self-test
    # small but force multiple K tiles with max_tk=256 so the accumulate +
    # epilogue pipeline path is exercised: K=768 -> TK=256 -> 3 K tiles.)
    batch, channels, img_size = 2, 3, 16
    in_features = channels * img_size * img_size

    key = jax.random.PRNGKey(0)
    k_img, k_par = jax.random.split(key)
    img = jax.random.normal(k_img, (batch, channels, img_size, img_size),
                            jnp.float32)
    params = init_params(k_par, in_features)

    # bf16 streaming is the default (matches the performance plan).
    packed = pack_params(params, max_tk=256, stream_dtype=jnp.bfloat16)

    out = discriminator_forward(img, packed)
    out = jax.block_until_ready(out)
    assert out.shape == (batch, 1), out.shape

    # Tight check against a reference using the same bf16 streamed operands.
    ref_bf16 = reference_forward_streamed(img, params, jnp.bfloat16)
    assert jnp.allclose(out, ref_bf16, atol=1e-3, rtol=1e-3), (out, ref_bf16)

    # Loose sanity check against the full-fp32 reference (bf16 rounding only).
    ref_fp32 = reference_forward(img, params)
    assert jnp.allclose(out, ref_fp32, atol=2e-2, rtol=2e-2), (out, ref_fp32)

    print("KERNEL_OK")
</pallas_src>

<mosaic_0001>
module attributes {stable_mosaic.version = 11 : i64} {
  func.func @_discriminator_kernel(%arg0: i32, %arg1: i32, %arg2: memref<8x256xbf16, #tpu.memory_space<vmem>>, %arg3: memref<256x512xbf16, #tpu.memory_space<vmem>>, %arg4: memref<1x512xf32, #tpu.memory_space<vmem>>, %arg5: memref<512x256xf32, #tpu.memory_space<vmem>>, %arg6: memref<1x256xf32, #tpu.memory_space<vmem>>, %arg7: memref<256x128xf32, #tpu.memory_space<vmem>>, %arg8: memref<1x128xf32, #tpu.memory_space<vmem>>, %arg9: memref<8x128xf32, #tpu.memory_space<vmem>>, %arg10: memref<8x512xf32, #tpu.memory_space<vmem>>) attributes {dimension_semantics = [#tpu.dimension_semantics<parallel>, #tpu.dimension_semantics<arbitrary>], iteration_bounds = array<i64: 1, 3>, scalar_prefetch = 0 : i64, scratch_operands = 1 : i64, tpu.core_type = #tpu.core_type<tc>, window_params = [{transform_indices = @transform_0, window_bounds = array<i64: 8, 256>}, {transform_indices = @transform_1, window_bounds = array<i64: 256, 512>}, {pipeline_mode = #tpu.pipeline_mode<synchronous>, transform_indices = @transform_2, window_bounds = array<i64: 1, 512>}, {pipeline_mode = #tpu.pipeline_mode<synchronous>, transform_indices = @transform_3, window_bounds = array<i64: 512, 256>}, {pipeline_mode = #tpu.pipeline_mode<synchronous>, transform_indices = @transform_4, window_bounds = array<i64: 1, 256>}, {pipeline_mode = #tpu.pipeline_mode<synchronous>, transform_indices = @transform_5, window_bounds = array<i64: 256, 128>}, {pipeline_mode = #tpu.pipeline_mode<synchronous>, transform_indices = @transform_6, window_bounds = array<i64: 1, 128>}, {transform_indices = @transform_7, window_bounds = array<i64: 8, 128>}]} {
    %c0_i32 = arith.constant 0 : i32
    %0 = arith.cmpi eq, %arg1, %c0_i32 : i32
    %1 = arith.extui %0 : i1 to i32
    %c0_i32_0 = arith.constant 0 : i32
    %2 = arith.cmpi ne, %1, %c0_i32_0 : i32
    scf.if %2 {
      %cst_9 = arith.constant 0.000000e+00 : f32
      %12 = vector.broadcast %cst_9 : f32 to vector<8x512xf32>
      %c0_10 = arith.constant 0 : index
      %c0_11 = arith.constant 0 : index
      %13 = vector.load %arg10[%c0_10, %c0_11] : memref<8x512xf32, #tpu.memory_space<vmem>>, vector<8x512xf32>
      tpu.vector_store %arg10[%c0_10, %c0_11], %12 {strides = array<i32>} : memref<8x512xf32, #tpu.memory_space<vmem>>, vector<8x512xf32>,
    } else {
    }
    %c0 = arith.constant 0 : index
    %c0_1 = arith.constant 0 : index
    %3 = vector.load %arg10[%c0, %c0_1] : memref<8x512xf32, #tpu.memory_space<vmem>>, vector<8x512xf32>
    %c0_2 = arith.constant 0 : index
    %c0_3 = arith.constant 0 : index
    %4 = vector.load %arg2[%c0_2, %c0_3] : memref<8x256xbf16, #tpu.memory_space<vmem>>, vector<8x256xbf16>
    %c0_4 = arith.constant 0 : index
    %c0_5 = arith.constant 0 : index
    %5 = vector.load %arg3[%c0_4, %c0_5] : memref<256x512xbf16, #tpu.memory_space<vmem>>, vector<256x512xbf16>
    %cst = arith.constant dense<0.000000e+00> : vector<8x512xf32>
    %6 = tpu.matmul %4, %5, %cst {dimension_numbers = #tpu.dot_dimension_numbers<[1], [0], [0], [1], [0, 0, 1, 1], [], []>} : vector<8x256xbf16>, vector<256x512xbf16>, vector<8x512xf32> -> vector<8x512xf32>
    %7 = arith.addf %3, %6 : vector<8x512xf32>
    %c0_6 = arith.constant 0 : index
    %c0_7 = arith.constant 0 : index
    %8 = vector.load %arg10[%c0_6, %c0_7] : memref<8x512xf32, #tpu.memory_space<vmem>>, vector<8x512xf32>
    tpu.vector_store %arg10[%c0_6, %c0_7], %7 {strides = array<i32>} : memref<8x512xf32, #tpu.memory_space<vmem>>, vector<8x512xf32>,
    %c2_i32 = arith.constant 2 : i32
    %9 = arith.cmpi eq, %arg1, %c2_i32 : i32
    %10 = arith.extui %9 : i1 to i32
    %c0_i32_8 = arith.constant 0 : i32
    %11 = arith.cmpi ne, %10, %c0_i32_8 : i32
    scf.if %11 {
      %c0_9 = arith.constant 0 : index
      %c0_10 = arith.constant 0 : index
      %12 = vector.load %arg10[%c0_9, %c0_10] : memref<8x512xf32, #tpu.memory_space<vmem>>, vector<8x512xf32>
      %c0_11 = arith.constant 0 : index
      %c0_12 = arith.constant 0 : index
      %13 = vector.load %arg4[%c0_11, %c0_12] : memref<1x512xf32, #tpu.memory_space<vmem>>, vector<1x512xf32>
      %14 = vector.broadcast %13 : vector<1x512xf32> to vector<8x512xf32>
      %15 = arith.addf %12, %14 : vector<8x512xf32>
      %cst_13 = arith.constant 0.000000e+00 : f32
      %16 = vector.broadcast %cst_13 : f32 to vector<8x512xf32>
      %17 = arith.cmpf oge, %15, %16 : vector<8x512xf32>
      %cst_14 = arith.constant 2.000000e-01 : f32
      %18 = vector.broadcast %cst_14 : f32 to vector<8x512xf32>
      %19 = arith.mulf %18, %15 : vector<8x512xf32>
      %20 = arith.select %17, %15, %19 : vector<8x512xi1>, vector<8x512xf32>
      %c0_15 = arith.constant 0 : index
      %c0_16 = arith.constant 0 : index
      %21 = vector.load %arg5[%c0_15, %c0_16] : memref<512x256xf32, #tpu.memory_space<vmem>>, vector<512x256xf32>
      %cst_17 = arith.constant dense<0.000000e+00> : vector<8x256xf32>
      %22 = tpu.matmul %20, %21, %cst_17 {dimension_numbers = #tpu.dot_dimension_numbers<[1], [0], [0], [1], [0, 0, 1, 1], [], []>} : vector<8x512xf32>, vector<512x256xf32>, vector<8x256xf32> -> vector<8x256xf32>
      %c0_18 = arith.constant 0 : index
      %c0_19 = arith.constant 0 : index
      %23 = vector.load %arg6[%c0_18, %c0_19] : memref<1x256xf32, #tpu.memory_space<vmem>>, vector<1x256xf32>
      %24 = vector.broadcast %23 : vector<1x256xf32> to vector<8x256xf32>
      %25 = arith.addf %22, %24 : vector<8x256xf32>
      %cst_20 = arith.constant 0.000000e+00 : f32
      %26 = vector.broadcast %cst_20 : f32 to vector<8x256xf32>
      %27 = arith.cmpf oge, %25, %26 : vector<8x256xf32>
      %cst_21 = arith.constant 2.000000e-01 : f32
      %28 = vector.broadcast %cst_21 : f32 to vector<8x256xf32>
      %29 = arith.mulf %28, %25 : vector<8x256xf32>
      %30 = arith.select %27, %25, %29 : vector<8x256xi1>, vector<8x256xf32>
      %c0_22 = arith.constant 0 : index
      %c0_23 = arith.constant 0 : index
      %31 = vector.load %arg7[%c0_22, %c0_23] : memref<256x128xf32, #tpu.memory_space<vmem>>, vector<256x128xf32>
      %cst_24 = arith.constant dense<0.000000e+00> : vector<8x128xf32>
      %32 = tpu.matmul %30, %31, %cst_24 {dimension_numbers = #tpu.dot_dimension_numbers<[1], [0], [0], [1], [0, 0, 1, 1], [], []>} : vector<8x256xf32>, vector<256x128xf32>, vector<8x128xf32> -> vector<8x128xf32>
      %c0_25 = arith.constant 0 : index
      %c0_26 = arith.constant 0 : index
      %33 = vector.load %arg8[%c0_25, %c0_26] : memref<1x128xf32, #tpu.memory_space<vmem>>, vector<1x128xf32>
      %34 = vector.broadcast %33 : vector<1x128xf32> to vector<8x128xf32>
      %35 = arith.addf %32, %34 : vector<8x128xf32>
      %cst_27 = arith.constant 0.000000e+00 : f32
      %36 = vector.broadcast %cst_27 : f32 to vector<8x128xf32>
      %37 = arith.subf %36, %35 : vector<8x128xf32>
      %38 = math.exp %37 : vector<8x128xf32>
      %cst_28 = arith.constant 1.000000e+00 : f32
      %39 = vector.broadcast %cst_28 : f32 to vector<8x128xf32>
      %40 = arith.addf %39, %38 : vector<8x128xf32>
      %cst_29 = arith.constant 1.000000e+00 : f32
      %41 = vector.broadcast %cst_29 : f32 to vector<8x128xf32>
      %42 = arith.divf %41, %40 : vector<8x128xf32>
      %c0_30 = arith.constant 0 : index
      %c0_31 = arith.constant 0 : index
      %43 = vector.load %arg9[%c0_30, %c0_31] : memref<8x128xf32, #tpu.memory_space<vmem>>, vector<8x128xf32>
      tpu.vector_store %arg9[%c0_30, %c0_31], %42 {strides = array<i32>} : memref<8x128xf32, #tpu.memory_space<vmem>>, vector<8x128xf32>,
    } else {
    }
    return
  }
  func.func @transform_0(%arg0: i32, %arg1: i32) -> (i32, i32) {
    %c0_i32 = arith.constant 0 : i32
    return %arg0, %arg1 : i32, i32
  }
  func.func @transform_1(%arg0: i32, %arg1: i32) -> (i32, i32) {
    %c0_i32 = arith.constant 0 : i32
    %c0_i32_0 = arith.constant 0 : i32
    return %arg1, %c0_i32 : i32, i32
  }
  func.func @transform_2(%arg0: i32, %arg1: i32) -> (i32, i32) {
    %c0_i32 = arith.constant 0 : i32
    %c0_i32_0 = arith.constant 0 : i32
    %c0_i32_1 = arith.constant 0 : i32
    return %c0_i32, %c0_i32_0 : i32, i32
  }
  func.func @transform_3(%arg0: i32, %arg1: i32) -> (i32, i32) {
    %c0_i32 = arith.constant 0 : i32
    %c0_i32_0 = arith.constant 0 : i32
    %c0_i32_1 = arith.constant 0 : i32
    return %c0_i32, %c0_i32_0 : i32, i32
  }
  func.func @transform_4(%arg0: i32, %arg1: i32) -> (i32, i32) {
    %c0_i32 = arith.constant 0 : i32
    %c0_i32_0 = arith.constant 0 : i32
    %c0_i32_1 = arith.constant 0 : i32
    return %c0_i32, %c0_i32_0 : i32, i32
  }
  func.func @transform_5(%arg0: i32, %arg1: i32) -> (i32, i32) {
    %c0_i32 = arith.constant 0 : i32
    %c0_i32_0 = arith.constant 0 : i32
    %c0_i32_1 = arith.constant 0 : i32
    return %c0_i32, %c0_i32_0 : i32, i32
  }
  func.func @transform_6(%arg0: i32, %arg1: i32) -> (i32, i32) {
    %c0_i32 = arith.constant 0 : i32
    %c0_i32_0 = arith.constant 0 : i32
    %c0_i32_1 = arith.constant 0 : i32
    return %c0_i32, %c0_i32_0 : i32, i32
  }
  func.func @transform_7(%arg0: i32, %arg1: i32) -> (i32, i32) {
    %c0_i32 = arith.constant 0 : i32
    %c0_i32_0 = arith.constant 0 : i32
    return %arg0, %c0_i32 : i32, i32
  }
}

</mosaic_0001>

<bundles_post_ra>
// kernel: _discriminator_forward.1
= control target key start
LH: loop header
LB: loop body
LE: loop exit
PB: predicated region body
PF: predicated region fallthrough
CT: control target
= control target key end

     0   :  { %12 = vsyncpa [#allocation4], 0  ;;  %s2384_s0 = inlined_call_operand.vmem [shape: bf16[8,768], index: 0, kind: input, shape index: {}]   ;;  %s2385_s1 = inlined_call_operand.hbm [shape: bf16[768,512], index: 1, kind: input, shape index: {}]   ;;  %s2386_s2 = inlined_call_operand.vmem [shape: f32[1,512], index: 2, kind: input, shape index: {}]   ;;  %s2387_s3 = inlined_call_operand.hbm [shape: f32[512,256], index: 3, kind: input, shape index: {}]   ;;  %s2388_s4 = inlined_call_operand.vmem [shape: f32[1,256], index: 4, kind: input, shape index: {}]   ;;  %s2389_s5 = inlined_call_operand.hbm [shape: f32[256,128], index: 5, kind: input, shape index: {}]   ;;  %s2390_s6 = inlined_call_operand.vmem [shape: f32[1,128], index: 6, kind: input, shape index: {}]   ;;  %s2391_s7 = inlined_call_operand.vmem [shape: f32[8,128], index: 7, kind: output, shape index: {}]  }
   0x1   :  { %14 = vsyncpa [#allocation4 + $0x1], 0 }
   0x2   :  { %15 = vsyncpa [#allocation6], 0  ;;  %s2088_s24 = smov 0   ;;  %s2090_s25 = smov 0  }
   0x3   :  { %s2092_s26 = smov 0   ;;  %s2094_s27 = smov 0  }
   0x4   :  { %s2096_s28 = smov 0   ;;  %s2098_s29 = smov 0  }
   0x5 LB: > { %s1427_s30 = sadd.s32 4294967295, %s2038_s29   ;;  %p81_p0 = scmp.ne.s32.totalorder %s2022_s25, %s2018_s24  ;;  %s2038_s29 = sphi %s2098_s29, %s21_s29   ;;  %s2034_s28 = sphi %s2096_s28, %s2408_s28   ;;  %s2030_s27 = sphi %s2094_s27, %s2407_s27   ;;  %s2026_s26 = sphi %s2092_s26, %s2406_s26   ;;  %s2022_s25 = sphi %s2090_s25, %s2405_s25   ;;  %s2018_s24 = sphi %s2088_s24, %s2404_s24  }
   0x6   : > { %p2118_p1 = scmp.eq.s32.totalorder %s1427_s30, 0  ;;  %p1428_p2 = scmp.ge.s32.totalorder %s2038_s29, 1 }
   0x7   : > { %p223_p3 = scmp.lt.s32.totalorder %s2038_s29, 4  ;;  %s2040_s11 = smov [#allocation5]  }
   0x8   : > { %s2396_s8 = scalar_select %p2118_p1, 1, 0 }
   0x9   : > { %p2126_p4 = por %p2118_p1, %p81_p0  ;;  %p2130_p5 = pnand %p1428_p2, %p223_p3 }
   0xa   : > { %s238_s12 = sshll.u32 %s2040_s11, 4  ;;  %s2041_s14 = smov [#allocation7]   ;;  %s239_s12 = int_to_ptr.vmem [resolvable:$true] %s238_s12 }
   0xb   : > { %s2397_s9 = scalar_select %p2126_p4, 1, 0 }
   0xc   : > { %s2398_s10 = scalar_select %p2130_p5, 1, 0 }
   0xd   : > { %p1725_p6 = pneg %p2130_p5  ;;  %s254_s15 = sshll.u32 %s2041_s14, 4  ;;  %s2142_s15 = int_to_ptr.vmem [resolvable:$true] %s254_s15 }
   0xe   : > { %s1898_s18 = scalar_lea.hbm %s2387_s3, 16384 }
   0xf   : > { %p2138_p7 = pnand %p1725_p6, %p2118_p1  ;;  %p1899_p8 = scmp.ne.s32.totalorder %s2387_s3, %s1898_s18 }
  0x10   : > { %p1905_p12 = scmp.lt.u32.totalorder %s1898_s18, %s2387_s3 }
  0x11   : > { %p1900_p9 = pneg %p2138_p7 }
  0x13   : > { %p1901_p10 = pnand %p1900_p9, %p1899_p8 }
  0x15   : > { %p1902_p11 = pneg %p1901_p10 }
  0x17   : > { %p1907_p13 = pnand %p1905_p12, %p1902_p11 }
  0x19   : > { %1910 = shalt.err (!%p1907_p13)
}
  0x1a   : > { %s1911_s23 = scalar_lea.vmem %s239_s12, 16384  ;;  %p1919_p6 = scmp.lt.s32.totalorder %s239_s12, %s239_s12 }
  0x1b   : > { %p1912_p0 = scmp.ne.s32.totalorder %s239_s12, %s1911_s23  ;;  %p1920_p1 = scmp.lt.s32.totalorder %s1911_s23, %s1911_s23 }
  0x1d   : > { %p1914_p2 = pnand %p1912_p0, %p1900_p9  ;;  %p1921_p4 = por %p1920_p1, %p1919_p6 }
  0x1f   : > { %p1915_p3 = pneg %p1914_p2 }
  0x21   : > { %p1922_p5 = pnand %p1921_p4, %p1915_p3 }
  0x23   : > { %1925 = shalt.err (!%p1922_p5)
}
  0x24   : > { %s2042_s24 = smov 256   ;;  %s2043_s30 = smov 16  }
  0x25   : > { %1728 = dma.hbm_to_vmem [thread:$0]  (!%p2138_p7), %s2387_s3, 16384, %s239_s12, [#allocation6], %s2042_s24, %s2042_s24, %s2043_s30  }
  0x26   : > { %s1926_s18 = scalar_lea.hbm %s2389_s5, 4096 }
  0x27   : > { %p1927_p1 = scmp.ne.s32.totalorder %s2389_s5, %s1926_s18  ;;  %p1933_p8 = scmp.lt.u32.totalorder %s1926_s18, %s2389_s5 }
  0x29   : > { %p1929_p4 = pnand %p1927_p1, %p1900_p9 }
  0x2b   : > { %p1930_p5 = pneg %p1929_p4 }
  0x2d   : > { %p1935_p10 = pnand %p1933_p8, %p1930_p5 }
  0x2f   : > { %1938 = shalt.err (!%p1935_p10)
}
  0x30   : > { %s1939_s12 = scalar_lea.vmem %s2142_s15, 4096  ;;  %p1947_p0 = scmp.lt.s32.totalorder %s2142_s15, %s2142_s15 }
  0x31   : > { %p1940_p11 = scmp.ne.s32.totalorder %s2142_s15, %s1939_s12  ;;  %p1948_p2 = scmp.lt.s32.totalorder %s1939_s12, %s1939_s12 }
  0x33   : > { %p1942_p12 = pnand %p1940_p11, %p1900_p9  ;;  %p1949_p3 = por %p1948_p2, %p1947_p0 }
  0x35   : > { %p1943_p13 = pneg %p1942_p12 }
  0x37   : > { %p1950_p6 = pnand %p1949_p3, %p1943_p13 }
  0x39   : > { %1953 = shalt.err (!%p1950_p6)
}
  0x3a   : > { %s2044_s23 = smov 128   ;;  %s2045_s11 = smov 8  }
  0x3b   : > { %1731 = dma.hbm_to_vmem [thread:$0]  (!%p2138_p7), %s2389_s5, 4096, %s2142_s15, [#allocation6], %s2044_s23, %s2044_s23, %s2045_s11  }
  0x3c   : > { %s30_s17 = sadd.s32 1, %s2034_s28  ;;  %s68_s18 = sadd.s32 1, %s2026_s26 }
  0x3d   : > { %p31_p9 = scmp.ge.s32.totalorder %s30_s17, 3  ;;  %p75_p1 = scmp.ne.s32.totalorder %s2026_s26, %s2022_s25 }
  0x3e   : > { %p76_p4 = scmp.eq.s32.totalorder %s2038_s29, 0  ;;  %p1738_p5 = scmp.lt.s32.totalorder %s2038_s29, 3 }
  0x3f   : > { %s2410_s17 = smov (%p31_p9, %s30_s17), 0  ;;  %s284_s19 = sand.u32 1, %s2026_s26  }
  0x40   : > { %p77_p8 = por %p76_p4, %p75_p1  ;;  %s65_s20 = ssub.s32 %s2034_s28, %s2410_s17 }
  0x41   : > { %p66_p10 = scmp.eq.s32.totalorder %s65_s20, 0  ;;  %s1432_s21 = sshll.u32 %s284_s19, 9 }
  0x42   : > { %s1515_s13 = sshll.u32 %s2034_s28, 13  ;;  %s288_s11 = scalar_lea.vmem [#allocation3], %s1432_s21 }
  0x43   : > { %s2207_s22 = scalar_select %p66_p10, %s2026_s26, %s68_s18  }
  0x44   : > { %s2212_s23 = scalar_lea.hbm %s2385_s1, %s1515_s13  ;;  %s296_s14 = sshll.u32 %s288_s11, 4  ;;  %s2214_s14 = int_to_ptr.vmem [resolvable:$true] %s296_s14 }
  0x45   : > { %p2218_p7 = pnand %p1738_p5, %p77_p8  ;;  %s2222_s18 = scalar_lea.sflag [#allocation4], %s284_s19 }
  0x46   : > { %s1954_s20 = scalar_lea.hbm %s2212_s23, 8192  ;;  %s1959_s12 = scalar_lea.hbm %s2385_s1, 24576 }
  0x47   : > { %p1955_p11 = scmp.ne.s32.totalorder %s2212_s23, %s1954_s20  ;;  %p1956_p12 = pneg %p2218_p7 }
  0x48   : > { %p1960_p2 = scmp.lt.u32.totalorder %s2212_s23, %s2385_s1  ;;  %p1961_p3 = scmp.lt.u32.totalorder %s1959_s12, %s1954_s20 }
  0x49   : > { %p1957_p13 = pnand %p1956_p12, %p1955_p11  ;;  %p1963_p9 = scmp.lt.u32.totalorder %s1954_s20, %s2212_s23 }
  0x4a   : > { %p1962_p6 = por %p1961_p3, %p1960_p2 }
  0x4b   : > { %p1958_p0 = pneg %p1957_p13 }
  0x4c   : > { %p1964_p1 = por %p1963_p9, %p1962_p6 }
  0x4e   : > { %p1965_p4 = pnand %p1964_p1, %p1958_p0 }
  0x50   : > { %1968 = shalt.err (!%p1965_p4)
}
  0x51   : > { %s1969_s19 = scalar_lea.vmem %s2214_s14, 8192  ;;  %s2046_s21 = smov [#allocation3]  }
  0x52   : > { %p1970_p5 = scmp.ne.s32.totalorder %s2214_s14, %s1969_s19  ;;  %s1974_s13 = sshll.u32 %s2046_s21, 4  ;;  %s1975_s13 = int_to_ptr.vmem [resolvable:$false] %s1974_s13 }
  0x53   : > { %s1976_s15 = scalar_lea.vmem %s1975_s13, 16384  ;;  %p1977_p11 = scmp.lt.s32.totalorder %s2214_s14, %s1975_s13 }
  0x54   : > { %p1972_p8 = pnand %p1970_p5, %p1956_p12  ;;  %p1978_p13 = scmp.lt.s32.totalorder %s1976_s15, %s1969_s19 }
  0x56   : > { %p1973_p10 = pneg %p1972_p8  ;;  %p1979_p2 = por %p1978_p13, %p1977_p11 }
  0x58   : > { %p1980_p3 = pnand %p1979_p2, %p1973_p10 }
  0x5a   : > { %1983 = shalt.err (!%p1980_p3)
}
  0x5b   : > { %1735 = dma.hbm_to_vmem [thread:$0]  (!%p2218_p7), %s2212_s23, 8192, %s2214_s14, %s2222_s18, %s2042_s24, %s2042_s24, %s2043_s30  }
  0x5c   : > { %p2401_p12 = scmp.ne.s32.totalorder %s2398_s10, 0 }
  0x5d   : > { %s310_s20 = sand.u32 (!%p2401_p12), 1, %s2022_s25   ;;  %p2402_p0 = scmp.ne.s32.totalorder (!%p2401_p12), %s2397_s9, 0 }
  0x5e   : > { %308 = sbr.rel (%p2401_p12) target bundleno = 911 (0x38f), region = 48  ;;  %s1437_s12 = sshll.u32 (!%p2401_p12), %s310_s20, 9 }
  0x5f   : > { %s311_s11 = scalar_lea.sflag (!%p2401_p12), [#allocation4], %s310_s20  ;;  %s2256_s19 = scalar_lea.vmem (!%p2401_p12), [#allocation3], %s1437_s12 }
  0x65   : > { %2009 = dma.done.wait (%p2402_p0), %s311_s11, 8192  }
  0x66   : > { %2011 = vsyncadd (%p2402_p0), %s311_s11, 4294959104  ;;  %p2403_p6 = scmp.ne.s32.totalorder %s2396_s8, 0 }
  0x68   : > { %2013 = dma.done.wait (%p2403_p6), [#allocation6], 20480  }
  0x69   : > { %2015 = vsyncadd (%p2403_p6), [#allocation6], 4294946816  ;;  %s1440_s10 = sshll.u32 %s2030_s27, 1  ;;  %p1442_p9 = scmp.ne.s32.totalorder %s2030_s27, 0 }
  0x6a   : > { %p364_p7 = scmp.lt.s32.totalorder %s1440_s10, 5  ;;  %v2047_v0 = vmov (!%p1442_p9), 0.0  }
  0x6b   : > { %379 = sbr.rel (%p1442_p9) target bundleno = 114 (0x72), region = 64  ;;  %380 = vst [vmem:[#allocation2] sm:$0xff] (!%p1442_p9), %v2047_v0  ;;  %381 = vst [vmem:[#allocation2 + $0x8] sm:$0xff] (!%p1442_p9), %v2047_v0 }
  0x6c   : > { %s2412_s10 = smov (!%p364_p7, %s1440_s10), 5  ;;  %382 = vst [vmem:[#allocation2 + $0x10] sm:$0xff] (!%p1442_p9), %v2047_v0  ;;  %383 = vst [vmem:[#allocation2 + $0x18] sm:$0xff] (!%p1442_p9), %v2047_v0 }
  0x6d   : > { %s1441_s24 = sshll.u32 %s2412_s10, 2 }
  0x6e   : > { %s2270_s14 = scalar_lea.vmem %s2384_s0, %s1441_s24 }
  0x72 PF: > { %v1796_v1 = vld [vmem:[%s2256_s19 + $0x4] ss:$16 sps:$4 sm:$0xff]   ;;  %v1798_v2 = vld [vmem:[%s2256_s19 + $0xc] ss:$16 sps:$4 sm:$0xff]   ;;  %v1800_v3 = vld [vmem:[%s2256_s19] ss:$16 sps:$4 sm:$0xff]  }
  0x73   : > { %780 = vmatprep.subr.bf16.mxu0 %v1796_v1  ;;  %v1801_v4 = vld [vmem:[%s2256_s19 + $0x8] ss:$16 sps:$4 sm:$0xff]   ;;  %821 = vmatprep.subr.bf16.mxu1 %v1798_v2  ;;  %v1802_v5 = vld [vmem:[%s2256_s19 + $0x24] ss:$16 sps:$4 sm:$0xff]   ;;  %v1804_v6 = vld [vmem:[%s2256_s19 + $0x2c] ss:$16 sps:$4 sm:$0xff]  }
  0x74   : > { %781 = vmatpush1.bf16.msra.mxu0 %v1800_v3  ;;  %822 = vmatpush1.bf16.msra.mxu1 %v1801_v4  ;;  %v1806_v7 = vld [vmem:[%s2256_s19 + $0x20] ss:$16 sps:$4 sm:$0xff]   ;;  %v1807_v8 = vld [vmem:[%s2256_s19 + $0x28] ss:$16 sps:$4 sm:$0xff]   ;;  %v1808_v9 = vld [vmem:[%s2256_s19 + $0x44] ss:$16 sps:$4 sm:$0xff]  }
  0x75   : > { %782 = vmatprep.subr.bf16.mxu0 %v1802_v5  ;;  %823 = vmatprep.subr.bf16.mxu1 %v1804_v6  ;;  %v1810_v10 = vld [vmem:[%s2256_s19 + $0x4c] ss:$16 sps:$4 sm:$0xff]   ;;  %v1812_v11 = vld [vmem:[%s2256_s19 + $0x40] ss:$16 sps:$4 sm:$0xff]   ;;  %v1813_v12 = vld [vmem:[%s2256_s19 + $0x48] ss:$16 sps:$4 sm:$0xff]  }
  0x76   : > { %v1814_v13 = vld [vmem:[%s2256_s19 + $0x64] ss:$16 sps:$4 sm:$0xff]   ;;  %v1816_v14 = vld [vmem:[%s2256_s19 + $0x6c] ss:$16 sps:$4 sm:$0xff]   ;;  %v1818_v15 = vld [vmem:[%s2256_s19 + $0x60] ss:$16 sps:$4 sm:$0xff]  }
  0x77   : > { %v1819_v16 = vld [vmem:[%s2256_s19 + $0x68] ss:$16 sps:$4 sm:$0xff]   ;;  %v1820_v17 = vld [vmem:[%s2256_s19 + $0x84] ss:$16 sps:$4 sm:$0xff]   ;;  %v1822_v18 = vld [vmem:[%s2256_s19 + $0x8c] ss:$16 sps:$4 sm:$0xff]  }
  0x78   : > { %783 = vmatpush1.bf16.msra.mxu0 %v1806_v7  ;;  %824 = vmatpush1.bf16.msra.mxu1 %v1807_v8  ;;  %v1824_v19 = vld [vmem:[%s2256_s19 + $0x80] ss:$16 sps:$4 sm:$0xff]   ;;  %v1825_v20 = vld [vmem:[%s2256_s19 + $0x88] ss:$16 sps:$4 sm:$0xff]   ;;  %v1826_v21 = vld [vmem:[%s2256_s19 + $0xa4] ss:$16 sps:$4 sm:$0xff]  }
  0x79   : > { %784 = vmatprep.subr.bf16.mxu0 %v1808_v9  ;;  %825 = vmatprep.subr.bf16.mxu1 %v1810_v10  ;;  %v1828_v22 = vld [vmem:[%s2256_s19 + $0xac] ss:$16 sps:$4 sm:$0xff]   ;;  %v1830_v23 = vld [vmem:[%s2256_s19 + $0xa0] ss:$16 sps:$4 sm:$0xff]   ;;  %v1831_v24 = vld [vmem:[%s2256_s19 + $0xa8] ss:$16 sps:$4 sm:$0xff]  }
  0x7a   : > { %v1832_v25 = vld [vmem:[%s2256_s19 + $0xc4] ss:$16 sps:$4 sm:$0xff]   ;;  %v1834_v26 = vld [vmem:[%s2256_s19 + $0xcc] ss:$16 sps:$4 sm:$0xff]   ;;  %v1836_v27 = vld [vmem:[%s2256_s19 + $0xc0] ss:$16 sps:$4 sm:$0xff]  }
  0x7b   : > { %v1837_v28 = vld [vmem:[%s2256_s19 + $0xc8] ss:$16 sps:$4 sm:$0xff]   ;;  %v1838_v29 = vld [vmem:[%s2256_s19 + $0xe4] ss:$16 sps:$4 sm:$0xff]   ;;  %v1840_v30 = vld [vmem:[%s2256_s19 + $0xec] ss:$16 sps:$4 sm:$0xff]  }
  0x7c   : > { %785 = vmatpush1.bf16.msra.mxu0 %v1812_v11  ;;  %826 = vmatpush1.bf16.msra.mxu1 %v1813_v12  ;;  %v1842_v31 = vld [vmem:[%s2256_s19 + $0xe0] ss:$16 sps:$4 sm:$0xff]   ;;  %v1843_v32 = vld [vmem:[%s2256_s19 + $0xe8] ss:$16 sps:$4 sm:$0xff]   ;;  %v1844_v33 = vld [vmem:[%s2256_s19 + $0x104] ss:$16 sps:$4 sm:$0xff]  }
  0x7d   : > { %786 = vmatprep.subr.bf16.mxu0 %v1814_v13  ;;  %827 = vmatprep.subr.bf16.mxu1 %v1816_v14  ;;  %v1846_v34 = vld [vmem:[%s2256_s19 + $0x10c] ss:$16 sps:$4 sm:$0xff]   ;;  %v1848_v35 = vld [vmem:[%s2256_s19 + $0x100] ss:$16 sps:$4 sm:$0xff]   ;;  %v1849_v36 = vld [vmem:[%s2256_s19 + $0x108] ss:$16 sps:$4 sm:$0xff]  }
  0x7e   : > { %v1850_v37 = vld [vmem:[%s2256_s19 + $0x124] ss:$16 sps:$4 sm:$0xff]   ;;  %v1852_v38 = vld [vmem:[%s2256_s19 + $0x12c] ss:$16 sps:$4 sm:$0xff]   ;;  %v1854_v39 = vld [vmem:[%s2256_s19 + $0x120] ss:$16 sps:$4 sm:$0xff]  }
  0x7f   : > { %v1855_v40 = vld [vmem:[%s2256_s19 + $0x128] ss:$16 sps:$4 sm:$0xff]   ;;  %v1856_v41 = vld [vmem:[%s2256_s19 + $0x144] ss:$16 sps:$4 sm:$0xff]   ;;  %v1858_v42 = vld [vmem:[%s2256_s19 + $0x14c] ss:$16 sps:$4 sm:$0xff]  }
  0x80   : > { %787 = vmatpush1.bf16.msra.mxu0 %v1818_v15  ;;  %828 = vmatpush1.bf16.msra.mxu1 %v1819_v16  ;;  %v1860_v43 = vld [vmem:[%s2256_s19 + $0x140] ss:$16 sps:$4 sm:$0xff]   ;;  %v1861_v44 = vld [vmem:[%s2256_s19 + $0x148] ss:$16 sps:$4 sm:$0xff]   ;;  %v1862_v45 = vld [vmem:[%s2256_s19 + $0x164] ss:$16 sps:$4 sm:$0xff]  }
  0x81   : > { %788 = vmatprep.subr.bf16.mxu0 %v1820_v17  ;;  %829 = vmatprep.subr.bf16.mxu1 %v1822_v18  ;;  %v1864_v46 = vld [vmem:[%s2256_s19 + $0x16c] ss:$16 sps:$4 sm:$0xff]   ;;  %v388_v47 = vld [vmem:[%s2270_s14] sm:$0xff]  ;;  %v1867_v50 = vld [vmem:[%s2256_s19 + $0x168] ss:$16 sps:$4 sm:$0xff]   ;;  %p1509_p1 = scmp.ne.s32.totalorder %s2030_s27, 2 }
  0x82   : > { %v1444_v48 = vcombine.high %v388_v47, %v388_v47  ;;  %v1866_v49 = vld [vmem:[%s2256_s19 + $0x160] ss:$16 sps:$4 sm:$0xff]   ;;  %v1868_v51 = vld [vmem:[%s2256_s19 + $0x184] ss:$16 sps:$4 sm:$0xff]   ;;  %v1870_v52 = vld [vmem:[%s2256_s19 + $0x18c] ss:$16 sps:$4 sm:$0xff]   ;;  %v1443_v3 = vcombine.low %v388_v47, %v388_v47 }
  0x83   : > { %v1872_v53 = vld [vmem:[%s2256_s19 + $0x180] ss:$16 sps:$4 sm:$0xff]   ;;  %v1873_v54 = vld [vmem:[%s2256_s19 + $0x188] ss:$16 sps:$4 sm:$0xff]   ;;  %v1874_v55 = vld [vmem:[%s2256_s19 + $0x1a4] ss:$16 sps:$4 sm:$0xff]  }
  0x84   : > { %789 = vmatpush1.bf16.msra.mxu0 %v1824_v19  ;;  %830 = vmatpush1.bf16.msra.mxu1 %v1825_v20  ;;  %v1876_v56 = vld [vmem:[%s2256_s19 + $0x1ac] ss:$16 sps:$4 sm:$0xff]   ;;  %v1878_v57 = vld [vmem:[%s2256_s19 + $0x1a0] ss:$16 sps:$4 sm:$0xff]   ;;  %v1879_v58 = vld [vmem:[%s2256_s19 + $0x1a8] ss:$16 sps:$4 sm:$0xff]  }
  0x85   : > { %790 = vmatprep.subr.bf16.mxu0 %v1826_v21  ;;  %831 = vmatprep.subr.bf16.mxu1 %v1828_v22  ;;  %v1880_v59 = vld [vmem:[%s2256_s19 + $0x1c4] ss:$16 sps:$4 sm:$0xff]   ;;  %v1882_v60 = vld [vmem:[%s2256_s19 + $0x1cc] ss:$16 sps:$4 sm:$0xff]   ;;  %v1884_v61 = vld [vmem:[%s2256_s19 + $0x1c0] ss:$16 sps:$4 sm:$0xff]  }
  0x86   : > { %812 = vmatprep.mubr.bf16.mxu0 %v1444_v48  ;;  %853 = vmatprep.mubr.bf16.mxu1 %v1444_v48  ;;  %v1885_v62 = vld [vmem:[%s2256_s19 + $0x1c8] ss:$16 sps:$4 sm:$0xff]   ;;  %v1886_v63 = vld [vmem:[%s2256_s19 + $0x1e4] ss:$16 sps:$4 sm:$0xff]   ;;  %v1888_v0 = vld [vmem:[%s2256_s19 + $0x1ec] ss:$16 sps:$4 sm:$0xff]  }
  0x87   : > { %v1890_v1 = vld [vmem:[%s2256_s19 + $0x1e0] ss:$16 sps:$4 sm:$0xff]   ;;  %v1891_v2 = vld [vmem:[%s2256_s19 + $0x1e8] ss:$16 sps:$4 sm:$0xff]  }
  0x88   : > { %791 = vmatpush1.bf16.msra.mxu0 %v1830_v23  ;;  %832 = vmatpush1.bf16.msra.mxu1 %v1831_v24  ;;  %v384_v4 = vld [vmem:[#allocation2] sm:$0xff]  ;;  %v386_v5 = vld [vmem:[#allocation2 + $0x10] sm:$0xff]  ;;  %v385_v6 = vld [vmem:[#allocation2 + $0x8] sm:$0xff] }
  0x89   : > { %792 = vmatprep.subr.bf16.mxu0 %v1832_v25  ;;  %833 = vmatprep.subr.bf16.mxu1 %v1834_v26  ;;  %v387_v7 = vld [vmem:[#allocation2 + $0x18] sm:$0xff]  ;;  %v917_v20 = vld [vmem:[#allocation5 + $0x8] sm:$0xff] (!%p1509_p1)  ;;  %v916_v22 = vld [vmem:[#allocation5] sm:$0xff] (!%p1509_p1) }
  0x8a   : > { %v919_v21 = vld [vmem:[#allocation5 + $0x18] sm:$0xff] (!%p1509_p1)  ;;  %v918_v24 = vld [vmem:[#allocation5 + $0x10] sm:$0xff] (!%p1509_p1)  ;;  %v981_v25 = vld [vmem:[#allocation5 + $0x208] sm:$0xff] (!%p1509_p1) }
  0x8b   : > { %v1551_v23 = vpack.c.bf16 (!%p1509_p1), %v919_v21, %v917_v20  ;;  %v983_v26 = vld [vmem:[#allocation5 + $0x218] sm:$0xff] (!%p1509_p1)  ;;  %v924_v47 = vld [vmem:[#allocation5 + $0x40] sm:$0xff] (!%p1509_p1)  ;;  %v926_v48 = vld [vmem:[#allocation5 + $0x50] sm:$0xff] (!%p1509_p1) }
  0x8c   : > { %793 = vmatpush1.bf16.msra.mxu0 %v1836_v27  ;;  %834 = vmatpush1.bf16.msra.mxu1 %v1837_v28  ;;  %v1553_v27 = vpack.c.bf16 (!%p1509_p1), %v918_v24, %v916_v22  ;;  %v1615_v28 = vpack.c.bf16 (!%p1509_p1), %v983_v26, %v981_v25  ;;  %v936_v21 = vld [vmem:[#allocation5 + $0xa0] sm:$0xff] (!%p1509_p1)  ;;  %v938_v22 = vld [vmem:[#allocation5 + $0xb0] sm:$0xff] (!%p1509_p1)  ;;  %v941_v26 = vld [vmem:[#allocation5 + $0xc8] sm:$0xff] (!%p1509_p1) }
  0x8d   : > { %794 = vmatprep.subr.bf16.mxu0 %v1838_v29  ;;  %835 = vmatprep.subr.bf16.mxu1 %v1840_v30  ;;  %v980_v29 = vld [vmem:[#allocation5 + $0x200] sm:$0xff] (!%p1509_p1)  ;;  %v982_v30 = vld [vmem:[#allocation5 + $0x210] sm:$0xff] (!%p1509_p1) }
  0x8e   : > { %v1002_v25 = vld [vmem:[#allocation5 + $0x2b0] sm:$0xff] (!%p1509_p1) }
  0x90   : > { %795 = vmatpush1.bf16.msra.mxu0 %v1842_v31  ;;  %836 = vmatpush1.bf16.msra.mxu1 %v1843_v32  ;;  %v921_v31 = vld [vmem:[#allocation5 + $0x28] sm:$0xff] (!%p1509_p1)  ;;  %v1617_v32 = vpack.c.bf16 (!%p1509_p1), %v982_v30, %v980_v29  ;;  %v1007_v29 = vld [vmem:[#allocation5 + $0x2d8] sm:$0xff] (!%p1509_p1)  ;;  %v1573_v30 = vpack.c.bf16 (!%p1509_p1), %v938_v22, %v936_v21  ;;  %v1020_v21 = vld [vmem:[#allocation5 + $0x340] sm:$0xff] (!%p1509_p1) }
  0x91   : > { %796 = vmatprep.subr.bf16.mxu0 %v1844_v33  ;;  %837 = vmatprep.subr.bf16.mxu1 %v1846_v34  ;;  %v923_v33 = vld [vmem:[#allocation5 + $0x38] sm:$0xff] (!%p1509_p1)  ;;  %v920_v34 = vld [vmem:[#allocation5 + $0x20] sm:$0xff] (!%p1509_p1) }
  0x94   : > { %797 = vmatpush1.bf16.msra.mxu0 %v1848_v35  ;;  %838 = vmatpush1.bf16.msra.mxu1 %v1849_v36  ;;  %v922_v35 = vld [vmem:[#allocation5 + $0x30] sm:$0xff] (!%p1509_p1)  ;;  %v1555_v36 = vpack.c.bf16 (!%p1509_p1), %v923_v33, %v921_v31  ;;  %v940_v33 = vld [vmem:[#allocation5 + $0xc0] sm:$0xff] (!%p1509_p1) }
  0x95   : > { %798 = vmatprep.subr.bf16.mxu0 %v1850_v37  ;;  %839 = vmatprep.subr.bf16.mxu1 %v1852_v38  ;;  %v1557_v37 = vpack.c.bf16 (!%p1509_p1), %v922_v35, %v920_v34  ;;  %v985_v38 = vld [vmem:[#allocation5 + $0x228] sm:$0xff] (!%p1509_p1)  ;;  %v942_v34 = vld [vmem:[#allocation5 + $0xd0] sm:$0xff] (!%p1509_p1)  ;;  %v1004_v35 = vld [vmem:[#allocation5 + $0x2c0] sm:$0xff] (!%p1509_p1) }
  0x98   : > { %799 = vmatpush1.bf16.msra.mxu0 %v1854_v39  ;;  %840 = vmatpush1.bf16.msra.mxu1 %v1855_v40  ;;  %v987_v39 = vld [vmem:[#allocation5 + $0x238] sm:$0xff] (!%p1509_p1)  ;;  %v984_v40 = vld [vmem:[#allocation5 + $0x220] sm:$0xff] (!%p1509_p1) }
  0x99   : > { %800 = vmatprep.subr.bf16.mxu0 %v1856_v41  ;;  %841 = vmatprep.subr.bf16.mxu1 %v1858_v42  ;;  %v1619_v41 = vpack.c.bf16 (!%p1509_p1), %v987_v39, %v985_v38  ;;  %v986_v42 = vld [vmem:[#allocation5 + $0x230] sm:$0xff] (!%p1509_p1)  ;;  %v945_v38 = vld [vmem:[#allocation5 + $0xe8] sm:$0xff] (!%p1509_p1)  ;;  %v947_v39 = vld [vmem:[#allocation5 + $0xf8] sm:$0xff] (!%p1509_p1) }
  0x9c   : > { %801 = vmatpush1.bf16.msra.mxu0 %v1860_v43  ;;  %842 = vmatpush1.bf16.msra.mxu1 %v1861_v44  ;;  %v925_v43 = vld [vmem:[#allocation5 + $0x48] sm:$0xff] (!%p1509_p1)  ;;  %v927_v44 = vld [vmem:[#allocation5 + $0x58] sm:$0xff] (!%p1509_p1) }
  0x9d   : > { %802 = vmatprep.subr.bf16.mxu0 %v1862_v45  ;;  %843 = vmatprep.subr.bf16.mxu1 %v1864_v46  ;;  %v1621_v45 = vpack.c.bf16 (!%p1509_p1), %v986_v42, %v984_v40  ;;  %v1559_v46 = vpack.c.bf16 (!%p1509_p1), %v927_v44, %v925_v43  ;;  %v1009_v40 = vld [vmem:[#allocation5 + $0x2e8] sm:$0xff] (!%p1509_p1)  ;;  %v1577_v42 = vpack.c.bf16 (!%p1509_p1), %v942_v34, %v940_v33 }
  0x9e   : > { %v1579_v44 = vpack.c.bf16 (!%p1509_p1), %v947_v39, %v945_v38  ;;  %v967_v39 = vld [vmem:[#allocation5 + $0x198] sm:$0xff] (!%p1509_p1) }
  0xa0   : > { %803 = vmatpush1.bf16.msra.mxu0 %v1866_v49  ;;  %844 = vmatpush1.bf16.msra.mxu1 %v1867_v50  ;;  %v989_v49 = vld [vmem:[#allocation5 + $0x248] sm:$0xff] (!%p1509_p1)  ;;  %v991_v50 = vld [vmem:[#allocation5 + $0x258] sm:$0xff] (!%p1509_p1) }
  0xa1   : > { %804 = vmatprep.subr.bf16.mxu0 %v1868_v51  ;;  %845 = vmatprep.subr.bf16.mxu1 %v1870_v52  ;;  %v988_v51 = vld [vmem:[#allocation5 + $0x240] sm:$0xff] (!%p1509_p1)  ;;  %v990_v52 = vld [vmem:[#allocation5 + $0x250] sm:$0xff] (!%p1509_p1) }
  0xa4   : > { %805 = vmatpush1.bf16.msra.mxu0 %v1872_v53  ;;  %846 = vmatpush1.bf16.msra.mxu1 %v1873_v54  ;;  %v1561_v53 = vpack.c.bf16 (!%p1509_p1), %v926_v48, %v924_v47  ;;  %v1623_v54 = vpack.c.bf16 (!%p1509_p1), %v991_v50, %v989_v49  ;;  %v1008_v47 = vld [vmem:[#allocation5 + $0x2e0] sm:$0xff] (!%p1509_p1)  ;;  %v1010_v49 = vld [vmem:[#allocation5 + $0x2f0] sm:$0xff] (!%p1509_p1)  ;;  %v949_v50 = vld [vmem:[#allocation5 + $0x108] sm:$0xff] (!%p1509_p1) }
  0xa5   : > { %806 = vmatprep.subr.bf16.mxu0 %v1874_v55  ;;  %847 = vmatprep.subr.bf16.mxu1 %v1876_v56  ;;  %v929_v55 = vld [vmem:[#allocation5 + $0x68] sm:$0xff] (!%p1509_p1)  ;;  %v931_v56 = vld [vmem:[#allocation5 + $0x78] sm:$0xff] (!%p1509_p1) }
  0xa8   : > { %807 = vmatpush1.bf16.msra.mxu0 %v1878_v57  ;;  %848 = vmatpush1.bf16.msra.mxu1 %v1879_v58  ;;  %v928_v57 = vld [vmem:[#allocation5 + $0x60] sm:$0xff] (!%p1509_p1)  ;;  %v1625_v58 = vpack.c.bf16 (!%p1509_p1), %v990_v52, %v988_v51  ;;  %v951_v51 = vld [vmem:[#allocation5 + $0x118] sm:$0xff] (!%p1509_p1)  ;;  %v1013_v52 = vld [vmem:[#allocation5 + $0x308] sm:$0xff] (!%p1509_p1) }
  0xa9   : > { %808 = vmatprep.subr.bf16.mxu0 %v1880_v59  ;;  %849 = vmatprep.subr.bf16.mxu1 %v1882_v60  ;;  %v1563_v59 = vpack.c.bf16 (!%p1509_p1), %v931_v56, %v929_v55  ;;  %v930_v60 = vld [vmem:[#allocation5 + $0x70] sm:$0xff] (!%p1509_p1)  ;;  %v1645_v55 = vpack.c.bf16 (!%p1509_p1), %v1010_v49, %v1008_v47  ;;  %v1583_v56 = vpack.c.bf16 (!%p1509_p1), %v951_v51, %v949_v50  ;;  %v964_v50 = vld [vmem:[#allocation5 + $0x180] sm:$0xff] (!%p1509_p1) }
  0xaa   : > { %v966_v51 = vld [vmem:[#allocation5 + $0x190] sm:$0xff] (!%p1509_p1) }
  0xac   : > { %809 = vmatpush1.bf16.msra.mxu0 %v1884_v61  ;;  %850 = vmatpush1.bf16.msra.mxu1 %v1885_v62  ;;  %v993_v61 = vld [vmem:[#allocation5 + $0x268] sm:$0xff] (!%p1509_p1)  ;;  %v995_v62 = vld [vmem:[#allocation5 + $0x278] sm:$0xff] (!%p1509_p1) }
  0xad   : > { %810 = vmatprep.subr.bf16.mxu0 %v1886_v63  ;;  %851 = vmatprep.subr.bf16.mxu1 %v1888_v0  ;;  %v1627_v63 = vpack.c.bf16 (!%p1509_p1), %v995_v62, %v993_v61  ;;  %v992_v0 = vld [vmem:[#allocation5 + $0x260] sm:$0xff] (!%p1509_p1)  ;;  %v1014_v61 = vld [vmem:[#allocation5 + $0x310] sm:$0xff] (!%p1509_p1)  ;;  %v953_v62 = vld [vmem:[#allocation5 + $0x128] sm:$0xff] (!%p1509_p1) }
  0xb0   : > { %811 = vmatpush1.bf16.msra.mxu0 %v1890_v1  ;;  %852 = vmatpush1.bf16.msra.mxu1 %v1891_v2  ;;  %v994_v1 = vld [vmem:[#allocation5 + $0x270] sm:$0xff] (!%p1509_p1)  ;;  %v933_v2 = vld [vmem:[#allocation5 + $0x88] sm:$0xff] (!%p1509_p1) }
  0xb1   : > { %1552 = vmatprep.subr.bf16.mxu1 (!%p1509_p1), %v1551_v23  ;;  %1616 = vmatprep.subr.bf16.mxu0 (!%p1509_p1), %v1615_v28  ;;  %v1000_v23 = vld [vmem:[#allocation5 + $0x2a0] sm:$0xff] (!%p1509_p1)  ;;  %v1005_v28 = vld [vmem:[#allocation5 + $0x2c8] sm:$0xff] (!%p1509_p1) }
  0xb2   : > { %v1637_v31 = vpack.c.bf16 (!%p1509_p1), %v1002_v25, %v1000_v23  ;;  %v1022_v23 = vld [vmem:[#allocation5 + $0x350] sm:$0xff] (!%p1509_p1)  ;;  %v963_v25 = vld [vmem:[#allocation5 + $0x178] sm:$0xff] (!%p1509_p1) }
  0xb3   : > { %813 = vmatmul.mubr.bf16.vlgmr.msra.gmra.mrb[0].mxu0 %v1443_v3  ;;  %854 = vmatmul.mubr.bf16.vlgmr.msra.gmra.mrb[0].mxu1 %v1443_v3  ;;  %v935_v3 = vld [vmem:[#allocation5 + $0x98] sm:$0xff] (!%p1509_p1)  ;;  %v1657_v33 = vpack.c.bf16 (!%p1509_p1), %v1022_v23, %v1020_v21  ;;  %v1038_v23 = vld [vmem:[#allocation5 + $0x3d0] sm:$0xff] (!%p1509_p1) }
  0xb4   : > { %1554 = vmatpush1.bf16.msra.mxu1 (!%p1509_p1), %v1553_v27  ;;  %1618 = vmatpush1.bf16.msra.mxu0 (!%p1509_p1), %v1617_v32  ;;  %v943_v27 = vld [vmem:[#allocation5 + $0xd8] sm:$0xff] (!%p1509_p1) }
  0xb5   : > { %1556 = vmatprep.subr.bf16.mxu1 (!%p1509_p1), %v1555_v36  ;;  %1620 = vmatprep.subr.bf16.mxu0 (!%p1509_p1), %v1619_v41  ;;  %v1575_v32 = vpack.c.bf16 (!%p1509_p1), %v943_v27, %v941_v26  ;;  %v1639_v36 = vpack.c.bf16 (!%p1509_p1), %v1007_v29, %v1005_v28  ;;  %v1011_v41 = vld [vmem:[#allocation5 + $0x2f8] sm:$0xff] (!%p1509_p1)  ;;  %v1025_v26 = vld [vmem:[#allocation5 + $0x368] sm:$0xff] (!%p1509_p1)  ;;  %v960_v29 = vld [vmem:[#allocation5 + $0x160] sm:$0xff] (!%p1509_p1) }
  0xb6   : > { %v1643_v48 = vpack.c.bf16 (!%p1509_p1), %v1011_v41, %v1009_v40  ;;  %v1027_v27 = vld [vmem:[#allocation5 + $0x378] sm:$0xff] (!%p1509_p1)  ;;  %v1029_v40 = vld [vmem:[#allocation5 + $0x388] sm:$0xff] (!%p1509_p1) }
  0xb7   : > { %v1659_v38 = vpack.c.bf16 (!%p1509_p1), %v1027_v27, %v1025_v26  ;;  %v1031_v41 = vld [vmem:[#allocation5 + $0x398] sm:$0xff] (!%p1509_p1)  ;;  %v977_v27 = vld [vmem:[#allocation5 + $0x1e8] sm:$0xff] (!%p1509_p1) }
  0xb8   : > { %1558 = vmatpush1.bf16.msra.mxu1 (!%p1509_p1), %v1557_v37  ;;  %1622 = vmatpush1.bf16.msra.mxu0 (!%p1509_p1), %v1621_v45  ;;  %v1006_v37 = vld [vmem:[#allocation5 + $0x2d0] sm:$0xff] (!%p1509_p1)  ;;  %v944_v45 = vld [vmem:[#allocation5 + $0xe0] sm:$0xff] (!%p1509_p1) }
  0xb9   : > { %1560 = vmatprep.subr.bf16.mxu1 (!%p1509_p1), %v1559_v46  ;;  %1624 = vmatprep.subr.bf16.mxu0 (!%p1509_p1), %v1623_v54  ;;  %v1641_v43 = vpack.c.bf16 (!%p1509_p1), %v1006_v37, %v1004_v35  ;;  %v946_v46 = vld [vmem:[#allocation5 + $0xf0] sm:$0xff] (!%p1509_p1)  ;;  %v1024_v35 = vld [vmem:[#allocation5 + $0x360] sm:$0xff] (!%p1509_p1)  ;;  %v965_v37 = vld [vmem:[#allocation5 + $0x188] sm:$0xff] (!%p1509_p1) }
  0xba   : > { %v1581_v54 = vpack.c.bf16 (!%p1509_p1), %v946_v46, %v944_v45  ;;  %v1599_v49 = vpack.c.bf16 (!%p1509_p1), %v967_v39, %v965_v37  ;;  %v976_v37 = vld [vmem:[#allocation5 + $0x1e0] sm:$0xff] (!%p1509_p1) }
  0xbb   : > { %v1040_v39 = vld [vmem:[#allocation5 + $0x3e0] sm:$0xff] (!%p1509_p1) }
  0xbc   : > { %1562 = vmatpush1.bf16.msra.mxu1 (!%p1509_p1), %v1561_v53  ;;  %1626 = vmatpush1.bf16.msra.mxu0 (!%p1509_p1), %v1625_v58  ;;  %v1015_v53 = vld [vmem:[#allocation5 + $0x318] sm:$0xff] (!%p1509_p1)  ;;  %v950_v58 = vld [vmem:[#allocation5 + $0x110] sm:$0xff] (!%p1509_p1) }
  0xbd   : > { %1564 = vmatprep.subr.bf16.mxu1 (!%p1509_p1), %v1563_v59  ;;  %1628 = vmatprep.subr.bf16.mxu0 (!%p1509_p1), %v1627_v63  ;;  %v1012_v59 = vld [vmem:[#allocation5 + $0x300] sm:$0xff] (!%p1509_p1)  ;;  %v955_v63 = vld [vmem:[#allocation5 + $0x138] sm:$0xff] (!%p1509_p1) }
 0x184   : > { %873 = sbr.rel (%p1509_p1) target bundleno = 911 (0x38f), region = 68 }
 0x186   : > { %v814_v8 = vpop.f32.mrb[0].mxu0  ;;  %v855_v9 = vpop.f32.mrb[0].mxu1 }
 0x187   : > { %v862_v10 = vadd.f32 %v814_v8, %v384_v4  ;;  %v864_v11 = vadd.f32 %v855_v9, %v386_v5  ;;  %v816_v12 = vpop.f32.mrb[1].mxu0  ;;  %v857_v13 = vpop.f32.mrb[1].mxu1  ;;  %v1565_v4 = vpack.c.bf16 (!%p1509_p1), %v930_v60, %v928_v57  ;;  %v997_v5 = vld [vmem:[#allocation5 + $0x288] sm:$0xff] (!%p1509_p1)  ;;  %v1567_v8 = vpack.c.bf16 (!%p1509_p1), %v935_v3, %v933_v2  ;;  %v932_v9 = vld [vmem:[#allocation5 + $0x80] sm:$0xff] (!%p1509_p1) }
 0x188   : > { %v863_v14 = vadd.f32 %v816_v12, %v385_v6  ;;  %v865_v15 = vadd.f32 %v857_v13, %v387_v7  ;;  %v818_v16 = vpop.f32.mrb[2].mxu0  ;;  %v859_v17 = vpop.f32.mrb[2].mxu1  ;;  %v999_v6 = vld [vmem:[#allocation5 + $0x298] sm:$0xff] (!%p1509_p1)  ;;  %v1629_v7 = vpack.c.bf16 (!%p1509_p1), %v994_v1, %v992_v0  ;;  %v998_v13 = vld [vmem:[#allocation5 + $0x290] sm:$0xff] (!%p1509_p1)  ;;  %v948_v57 = vld [vmem:[#allocation5 + $0x100] sm:$0xff] (!%p1509_p1)  ;;  %v1647_v60 = vpack.c.bf16 (!%p1509_p1), %v1015_v53, %v1013_v52 }
 0x189   : > { %866 = vst [vmem:[#allocation2] sm:$0xff] %v862_v10  ;;  %868 = vst [vmem:[#allocation2 + $0x10] sm:$0xff] %v864_v11  ;;  %v819_v18 = vpop.f32.mrb[3].mxu0  ;;  %v860_v19 = vpop.f32.mrb[3].mxu1  ;;  %v934_v10 = vld [vmem:[#allocation5 + $0x90] sm:$0xff] (!%p1509_p1)  ;;  %v996_v11 = vld [vmem:[#allocation5 + $0x280] sm:$0xff] (!%p1509_p1)  ;;  %v1631_v12 = vpack.c.bf16 (!%p1509_p1), %v999_v6, %v997_v5  ;;  %1566 = vmatpush1.bf16.msra.mxu1 (!%p1509_p1), %v1565_v4  ;;  %v1585_v2 = vpack.c.bf16 (!%p1509_p1), %v950_v58, %v948_v57  ;;  %v880_v3 = vlaneseq (!%p1509_p1)  ;;  %v1649_v4 = vpack.c.bf16 (!%p1509_p1), %v1014_v61, %v1012_v59 }
 0x18a   : > { %867 = vst [vmem:[#allocation2 + $0x8] sm:$0xff] %v863_v14  ;;  %869 = vst [vmem:[#allocation2 + $0x18] sm:$0xff] %v865_v15  ;;  %v937_v14 = vld [vmem:[#allocation5 + $0xa8] sm:$0xff] (!%p1509_p1)  ;;  %v939_v15 = vld [vmem:[#allocation5 + $0xb8] sm:$0xff] (!%p1509_p1)  ;;  %v1569_v18 = vpack.c.bf16 (!%p1509_p1), %v934_v10, %v932_v9  ;;  %1630 = vmatpush1.bf16.msra.mxu0 (!%p1509_p1), %v1629_v7  ;;  %1568 = vmatprep.subr.bf16.mxu1 (!%p1509_p1), %v1567_v8  ;;  %v1633_v19 = vpack.c.bf16 (!%p1509_p1), %v998_v13, %v996_v11 }
 0x18b   : > { %v1001_v16 = vld [vmem:[#allocation5 + $0x2a8] sm:$0xff]  ;;  %v1003_v17 = vld [vmem:[#allocation5 + $0x2b8] sm:$0xff]  ;;  %v1571_v20 = vpack.c.bf16 %v939_v15, %v937_v14  ;;  %1632 = vmatprep.subr.bf16.mxu0 %v1631_v12  ;;  %v1587_v5 = vpack.c.bf16 %v955_v63, %v953_v62  ;;  %v952_v6 = vld [vmem:[#allocation5 + $0x120] sm:$0xff]  ;;  %v1663_v53 = vpack.c.bf16 %v1031_v41, %v1029_v40  ;;  %v1601_v62 = vpack.c.bf16 %v966_v51, %v964_v50 }
 0x18c   : > { %v1635_v24 = vpack.c.bf16 %v1003_v17, %v1001_v16  ;;  %v1017_v0 = vld [vmem:[#allocation5 + $0x328] sm:$0xff]  ;;  %v1019_v1 = vld [vmem:[#allocation5 + $0x338] sm:$0xff]  ;;  %v954_v7 = vld [vmem:[#allocation5 + $0x130] sm:$0xff]  ;;  %v2339_v16 = vshrl.u32 %v880_v3, 7 }
 0x18d   : > { %1570 = vmatpush1.bf16.msra.mxu1 %v1569_v18  ;;  %v1016_v8 = vld [vmem:[#allocation5 + $0x320] sm:$0xff]  ;;  %v1651_v9 = vpack.c.bf16 %v1019_v1, %v1017_v0  ;;  %v1018_v10 = vld [vmem:[#allocation5 + $0x330] sm:$0xff]  ;;  %v957_v11 = vld [vmem:[#allocation5 + $0x148] sm:$0xff]  ;;  %v1589_v15 = vpack.c.bf16 %v954_v7, %v952_v6 }
 0x18e   : > { %1634 = vmatpush1.bf16.msra.mxu0 %v1633_v19  ;;  %1572 = vmatprep.subr.bf16.mxu1 %v1571_v20  ;;  %v959_v12 = vld [vmem:[#allocation5 + $0x158] sm:$0xff]  ;;  %v1021_v13 = vld [vmem:[#allocation5 + $0x348] sm:$0xff]  ;;  %v1653_v17 = vpack.c.bf16 %v1018_v10, %v1016_v8  ;;  %v956_v19 = vld [vmem:[#allocation5 + $0x140] sm:$0xff]  ;;  %v882_v61 = vsub.s32 0, %v2339_v16  ;;  %v890_v0 = vsub.s32 2, %v2339_v16 }
 0x18f   : > { %1636 = vmatprep.subr.bf16.mxu0 %v1635_v24  ;;  %v1023_v14 = vld [vmem:[#allocation5 + $0x358] sm:$0xff]  ;;  %v1591_v18 = vpack.c.bf16 %v959_v12, %v957_v11  ;;  %v958_v20 = vld [vmem:[#allocation5 + $0x150] sm:$0xff]  ;;  %v961_v24 = vld [vmem:[#allocation5 + $0x168] sm:$0xff] }
 0x190   : > { %v1655_v22 = vpack.c.bf16 %v1023_v14, %v1021_v13  ;;  %v1593_v28 = vpack.c.bf16 %v958_v20, %v956_v19  ;;  %v1595_v34 = vpack.c.bf16 %v963_v25, %v961_v24  ;;  %v1028_v52 = vld [vmem:[#allocation5 + $0x380] sm:$0xff]  ;;  %v1033_v59 = vld [vmem:[#allocation5 + $0x3a8] sm:$0xff]  ;;  %v1034_v8 = vld [vmem:[#allocation5 + $0x3b0] sm:$0xff] }
 0x191   : > { %1574 = vmatpush1.bf16.msra.mxu1 %v1573_v30  ;;  %v962_v30 = vld [vmem:[#allocation5 + $0x170] sm:$0xff]  ;;  %v968_v3 = vld [vmem:[#allocation5 + $0x1a0] sm:$0xff]  ;;  %v975_v10 = vld [vmem:[#allocation5 + $0x1d8] sm:$0xff] }
 0x192   : > { %1638 = vmatpush1.bf16.msra.mxu0 %v1637_v31  ;;  %1576 = vmatprep.subr.bf16.mxu1 %v1575_v32  ;;  %v886_v31 = vsub.s32 1, %v2339_v16  ;;  %v894_v32 = vsub.s32 3, %v2339_v16  ;;  %v1597_v45 = vpack.c.bf16 %v962_v30, %v960_v29  ;;  %v1037_v12 = vld [vmem:[#allocation5 + $0x3c8] sm:$0xff]  ;;  %v1039_v13 = vld [vmem:[#allocation5 + $0x3d8] sm:$0xff]  ;;  %v874_v24 = vld [vmem:[#allocation2] sm:$0xff] }
 0x193   : > { %1640 = vmatprep.subr.bf16.mxu0 %v1639_v36  ;;  %v1026_v36 = vld [vmem:[#allocation5 + $0x370] sm:$0xff]  ;;  %v1671_v26 = vpack.c.bf16 %v1039_v13, %v1037_v12  ;;  %v1041_v30 = vld [vmem:[#allocation5 + $0x3e8] sm:$0xff]  ;;  %v1204_v50 = vld [vmem:[#allocation7] sm:$0xff] }
 0x194   : > { %v876_v29 = vld [vmem:[#allocation2 + $0x10] sm:$0xff]  ;;  %v1205_v51 = vld [vmem:[#allocation7 + $0x8] sm:$0xff]  ;;  %v1212_v13 = vld [vmem:[#allocation7 + $0x40] sm:$0xff] }
 0x195   : > { %1578 = vmatpush1.bf16.msra.mxu1 %v1577_v42  ;;  %v875_v42 = vld [vmem:[#allocation2 + $0x8] sm:$0xff]  ;;  %v1510_v16 = vld [vmem:[%s2390_s6] ss:$0 sm:$0xff] }
 0x196   : > { %1642 = vmatpush1.bf16.msra.mxu0 %v1641_v43  ;;  %1580 = vmatprep.subr.bf16.mxu1 %v1579_v44  ;;  %v878_v43 = vld [vmem:[%s2386_s2] sm:$0xf]  ;;  %v877_v44 = vld [vmem:[#allocation2 + $0x18] sm:$0xff] }
 0x197   : > { %1644 = vmatprep.subr.bf16.mxu0 %v1643_v48  ;;  %v887_v46 = vrot.slane %v878_v43, %v886_v31  ;;  %v895_v47 = vrot.slane %v878_v43, %v894_v32  ;;  %v1661_v48 = vpack.c.bf16 %v1026_v36, %v1024_v35  ;;  %v883_v19 = vrot.slane %v878_v43, %v882_v61  ;;  %v1043_v32 = vld [vmem:[#allocation5 + $0x3f8] sm:$0xff] }
 0x198   : > { %v891_v25 = vrot.slane %v878_v43, %v890_v0  ;;  %v1675_v41 = vpack.c.bf16 %v1043_v32, %v1041_v30  ;;  %v1220_v43 = vld [vmem:[#allocation7 + $0x80] sm:$0xff]  ;;  %v1235_v30 = vld [vmem:[#allocation7 + $0xf8] sm:$0xff] }
 0x199   : > { %1582 = vmatpush1.bf16.msra.mxu1 %v1581_v54  ;;  %v1030_v54 = vld [vmem:[#allocation5 + $0x390] sm:$0xff]  ;;  %v901_v57 = vadd.f32 %v887_v46, %v875_v42  ;;  %v903_v58 = vadd.f32 %v895_v47, %v877_v44  ;;  %v1221_v44 = vld [vmem:[#allocation7 + $0x88] sm:$0xff] }
 0x19a   : > { %1646 = vmatpush1.bf16.msra.mxu0 %v1645_v55  ;;  %1584 = vmatprep.subr.bf16.mxu1 %v1583_v56  ;;  %v969_v55 = vld [vmem:[#allocation5 + $0x1a8] sm:$0xff]  ;;  %v971_v56 = vld [vmem:[#allocation5 + $0x1b8] sm:$0xff]  ;;  %v1665_v1 = vpack.c.bf16 %v1030_v54, %v1028_v52  ;;  %v902_v40 = vadd.f32 %v891_v25, %v876_v29  ;;  %v1042_v42 = vld [vmem:[#allocation5 + $0x3f0] sm:$0xff] }
 0x19b   : > { %1648 = vmatprep.subr.bf16.mxu0 %v1647_v60  ;;  %v1035_v60 = vld [vmem:[#allocation5 + $0x3b8] sm:$0xff]  ;;  %vm905_vm0 = vcmp.ge.f32.partialorder %v901_v57, 0.0  ;;  %v909_v63 = vmul.f32 0.2, %v901_v57  ;;  %vm907_vm1 = vcmp.ge.f32.partialorder %v903_v58, 0.0  ;;  %v1677_v47 = vpack.c.bf16 %v1042_v42, %v1040_v39  ;;  %v1222_v52 = vld [vmem:[#allocation7 + $0x90] sm:$0xff] }
 0x19c   : > { %v911_v6 = vmul.f32 0.2, %v903_v58  ;;  %v1667_v7 = vpack.c.bf16 %v1035_v60, %v1033_v59  ;;  %vm906_vm3 = vcmp.ge.f32.partialorder %v902_v40, 0.0  ;;  %v1207_v59 = vld [vmem:[#allocation7 + $0x18] sm:$0xff]  ;;  %v1224_v60 = vld [vmem:[#allocation7 + $0xa0] sm:$0xff]  ;;  %v1234_v29 = vld [vmem:[#allocation7 + $0xf0] sm:$0xff] }
 0x19d   : > { %1586 = vmatpush1.bf16.msra.mxu1 %v1585_v2  ;;  %v1603_v2 = vpack.c.bf16 %v971_v56, %v969_v55  ;;  %v913_v11 = vsel %vm905_vm0, %v901_v57, %v909_v63  ;;  %v1681_v55 = vpack.c.bf16 %v1205_v51, %v1204_v50  ;;  %v1707_v32 = vpack.c.bf16 %v1235_v30, %v1234_v29 }
 0x19e   : > { %1650 = vmatpush1.bf16.msra.mxu0 %v1649_v4  ;;  %1588 = vmatprep.subr.bf16.mxu1 %v1587_v5  ;;  %v970_v4 = vld [vmem:[#allocation5 + $0x1b0] sm:$0xff]  ;;  %v1032_v5 = vld [vmem:[#allocation5 + $0x3a0] sm:$0xff]  ;;  %v915_v14 = vsel %vm907_vm1, %v903_v58, %v911_v6 }
 0x19f   : > { %1652 = vmatprep.subr.bf16.mxu0 %v1651_v9  ;;  %v973_v9 = vld [vmem:[#allocation5 + $0x1c8] sm:$0xff]  ;;  %1120 = vmatprep.mubr.f32.mxu1 %v913_v11  ;;  %v1669_v20 = vpack.c.bf16 %v1034_v8, %v1032_v5  ;;  %v1206_v58 = vld [vmem:[#allocation7 + $0x10] sm:$0xff]  ;;  %v1211_v8 = vld [vmem:[#allocation7 + $0x38] sm:$0xff] }
 0x1a0   : > { %1191 = vmatprep.mubr.f32.mxu0 %v915_v14  ;;  %v1607_v21 = vpack.c.bf16 %v975_v10, %v973_v9  ;;  %v1685_v63 = vpack.c.bf16 %v1207_v59, %v1206_v58  ;;  %v1228_v9 = vld [vmem:[#allocation7 + $0xc0] sm:$0xff]  ;;  %v1229_v10 = vld [vmem:[#allocation7 + $0xc8] sm:$0xff] }
 0x1a1   : > { %1590 = vmatpush1.bf16.msra.mxu1 %v1589_v15  ;;  %v1605_v15 = vpack.c.bf16 %v970_v4, %v968_v3  ;;  %v1226_v3 = vld [vmem:[#allocation7 + $0xb0] sm:$0xff]  ;;  %v1227_v4 = vld [vmem:[#allocation7 + $0xb8] sm:$0xff]  ;;  %v1695_v12 = vpack.c.bf16 %v1229_v10, %v1228_v9  ;;  %v1213_v14 = vld [vmem:[#allocation7 + $0x48] sm:$0xff] }
 0x1a2   : > { %1654 = vmatpush1.bf16.msra.mxu0 %v1653_v17  ;;  %1592 = vmatprep.subr.bf16.mxu1 %v1591_v18  ;;  %v972_v17 = vld [vmem:[#allocation5 + $0x1c0] sm:$0xff]  ;;  %v974_v18 = vld [vmem:[#allocation5 + $0x1d0] sm:$0xff]  ;;  %v1691_v6 = vpack.c.bf16 %v1227_v4, %v1226_v3 }
 0x1a3   : > { %1656 = vmatprep.subr.bf16.mxu0 %v1655_v22  ;;  %v1036_v22 = vld [vmem:[#allocation5 + $0x3c0] sm:$0xff] }
 0x1a4   : > { %v1673_v35 = vpack.c.bf16 %v1038_v23, %v1036_v22  ;;  %v1232_v23 = vld [vmem:[#allocation7 + $0xe0] sm:$0xff] }
 0x1a5   : > { %1594 = vmatpush1.bf16.msra.mxu1 %v1593_v28  ;;  %v979_v28 = vld [vmem:[#allocation5 + $0x1f8] sm:$0xff] }
 0x1a6   : > { %1658 = vmatpush1.bf16.msra.mxu0 %v1657_v33  ;;  %1596 = vmatprep.subr.bf16.mxu1 %v1595_v34  ;;  %v1609_v33 = vpack.c.bf16 %v974_v18, %v972_v17  ;;  %v900_v34 = vadd.f32 %v883_v19, %v874_v24  ;;  %v1611_v36 = vpack.c.bf16 %v979_v28, %v977_v27  ;;  %v1231_v17 = vld [vmem:[#allocation7 + $0xd8] sm:$0xff]  ;;  %v1233_v24 = vld [vmem:[#allocation7 + $0xe8] sm:$0xff] }
 0x1a7   : > { %1660 = vmatprep.subr.bf16.mxu0 %v1659_v38  ;;  %v978_v38 = vld [vmem:[#allocation5 + $0x1f0] sm:$0xff]  ;;  %v1697_v18 = vpack.c.bf16 %v1213_v14, %v1212_v13  ;;  %v1703_v25 = vpack.c.bf16 %v1233_v24, %v1232_v23  ;;  %v1217_v27 = vld [vmem:[#allocation7 + $0x68] sm:$0xff] }
 0x1a8   : > { %v908_v46 = vmul.f32 0.2, %v900_v34  ;;  %vm904_vm2 = vcmp.ge.f32.partialorder %v900_v34, 0.0 }
 0x1a9   : > { %1598 = vmatpush1.bf16.msra.mxu1 %v1597_v45  ;;  %v1613_v45 = vpack.c.bf16 %v978_v38, %v976_v37 }
 0x1aa   : > { %1662 = vmatpush1.bf16.msra.mxu0 %v1661_v48  ;;  %1600 = vmatprep.subr.bf16.mxu1 %v1599_v49  ;;  %v910_v48 = vmul.f32 0.2, %v902_v40  ;;  %v1679_v49 = vpack.c.bf16 %v1221_v44, %v1220_v43  ;;  %v912_v54 = vsel %vm904_vm2, %v900_v34, %v908_v46  ;;  %v1219_v34 = vld [vmem:[#allocation7 + $0x78] sm:$0xff] }
 0x1ab   : > { %1664 = vmatprep.subr.bf16.mxu0 %v1663_v53  ;;  %v1223_v53 = vld [vmem:[#allocation7 + $0x98] sm:$0xff] }
 0x1ac   : > { %v914_v56 = vsel %vm906_vm3, %v902_v40, %v910_v48  ;;  %v1683_v57 = vpack.c.bf16 %v1223_v53, %v1222_v52 }
 0x1ad   : > { %1602 = vmatpush1.bf16.msra.mxu1 %v1601_v62  ;;  %v1225_v62 = vld [vmem:[#allocation7 + $0xa8] sm:$0xff] }
 0x1ae   : > { %1666 = vmatpush1.bf16.msra.mxu0 %v1665_v1  ;;  %1604 = vmatprep.subr.bf16.mxu1 %v1603_v2  ;;  %v1687_v0 = vpack.c.bf16 %v1225_v62, %v1224_v60  ;;  %v1208_v1 = vld [vmem:[#allocation7 + $0x20] sm:$0xff]  ;;  %v1209_v2 = vld [vmem:[#allocation7 + $0x28] sm:$0xff] }
 0x1af   : > { %1668 = vmatprep.subr.bf16.mxu0 %v1667_v7  ;;  %v1689_v5 = vpack.c.bf16 %v1209_v2, %v1208_v1  ;;  %v1210_v7 = vld [vmem:[#allocation7 + $0x30] sm:$0xff] }
 0x1b0   : > { %v1693_v11 = vpack.c.bf16 %v1211_v8, %v1210_v7 }
 0x1b1   : > { %1606 = vmatpush1.bf16.msra.mxu1 %v1605_v15  ;;  %v1230_v15 = vld [vmem:[#allocation7 + $0xd0] sm:$0xff] }
 0x1b2   : > { %1670 = vmatpush1.bf16.msra.mxu0 %v1669_v20  ;;  %1608 = vmatprep.subr.bf16.mxu1 %v1607_v21  ;;  %v1699_v19 = vpack.c.bf16 %v1231_v17, %v1230_v15  ;;  %v1214_v20 = vld [vmem:[#allocation7 + $0x50] sm:$0xff]  ;;  %v1215_v21 = vld [vmem:[#allocation7 + $0x58] sm:$0xff] }
 0x1b3   : > { %1672 = vmatprep.subr.bf16.mxu0 %v1671_v26  ;;  %v1701_v22 = vpack.c.bf16 %v1215_v21, %v1214_v20  ;;  %v1216_v26 = vld [vmem:[#allocation7 + $0x60] sm:$0xff] }
 0x1b4   : > { %v1705_v28 = vpack.c.bf16 %v1217_v27, %v1216_v26 }
 0x1b5   : > { %1610 = vmatpush1.bf16.msra.mxu1 %v1609_v33  ;;  %v1218_v33 = vld [vmem:[#allocation7 + $0x70] sm:$0xff] }
 0x1b6   : > { %1674 = vmatpush1.bf16.msra.mxu0 %v1673_v35  ;;  %1612 = vmatprep.subr.bf16.mxu1 %v1611_v36  ;;  %v1709_v35 = vpack.c.bf16 %v1219_v34, %v1218_v33  ;;  %v1044_v36 = vld [vmem:[%s2388_s4] sm:$0x3] }
 0x1b7   : > { %1676 = vmatprep.subr.bf16.mxu0 %v1675_v41  ;;  %v1049_v37 = vrot.slane %v1044_v36, %v882_v61  ;;  %v1053_v38 = vrot.slane %v1044_v36, %v886_v31 }
 0x1b9   : > { %1614 = vmatpush1.bf16.msra.mxu1 %v1613_v45 }
 0x1ba   : > { %1678 = vmatpush1.bf16.msra.mxu0 %v1677_v47  ;;  %1680 = vmatprep.subr.bf16.mxu1 %v1679_v49 }
 0x1bc   : > { %1121 = vmatmul.mubr.f32.vlgmr.msra.gmra.mrb[0].mxu1 %v912_v54 }
 0x1bd   : > { %1192 = vmatmul.mubr.f32.vlgmr.msra.gmra.mrb[0].mxu0 %v914_v56  ;;  %1682 = vmatpush3.bf16.msra.mxu1 %v1681_v55 }
 0x1be   : > { %1684 = vmatprep.subr.bf16.mxu1 %v1683_v57 }
 0x1c1   : > { %1686 = vmatpush3.bf16.msra.mxu1 %v1685_v63 }
 0x1c2   : > { %1688 = vmatprep.subr.bf16.mxu1 %v1687_v0 }
 0x1c5   : > { %1690 = vmatpush3.bf16.msra.mxu1 %v1689_v5 }
 0x1c6   : > { %1692 = vmatprep.subr.bf16.mxu1 %v1691_v6 }
 0x1c9   : > { %1694 = vmatpush3.bf16.msra.mxu1 %v1693_v11 }
 0x1ca   : > { %1696 = vmatprep.subr.bf16.mxu1 %v1695_v12 }
 0x1cd   : > { %1698 = vmatpush3.bf16.msra.mxu1 %v1697_v18 }
 0x1ce   : > { %1700 = vmatprep.subr.bf16.mxu1 %v1699_v19 }
 0x1d1   : > { %1702 = vmatpush3.bf16.msra.mxu1 %v1701_v22 }
 0x1d2   : > { %1704 = vmatprep.subr.bf16.mxu1 %v1703_v25 }
 0x1d5   : > { %1706 = vmatpush3.bf16.msra.mxu1 %v1705_v28 }
 0x1d6   : > { %1708 = vmatprep.subr.bf16.mxu1 %v1707_v32 }
 0x1d9   : > { %1710 = vmatpush3.bf16.msra.mxu1 %v1709_v35 }
 0x28f   : > { %v1122_v39 = vpop.f32.mrb[0].mxu1 }
 0x290   : > { %v1123_v40 = vadd.f32 %v1122_v39, %v1049_v37  ;;  %v1124_v41 = vpop.f32.mrb[1].mxu1  ;;  %v1193_v42 = vpop.f32.mrb[0].mxu0 }
 0x291   : > { %v1125_v43 = vadd.f32 %v1124_v41, %v1053_v38  ;;  %v1195_v44 = vpop.f32.mrb[1].mxu0 }
 0x292   : > { %v1194_v45 = vadd.f32 %v1193_v42, %v1123_v40 }
 0x293   : > { %v1196_v46 = vadd.f32 %v1195_v44, %v1125_v43 }
 0x294   : > { %v1200_v47 = vmul.f32 0.2, %v1194_v45  ;;  %vm1198_vm4 = vcmp.ge.f32.partialorder %v1194_v45, 0.0 }
 0x295   : > { %v1201_v48 = vmul.f32 0.2, %v1196_v46  ;;  %vm1199_vm5 = vcmp.ge.f32.partialorder %v1196_v46, 0.0 }
 0x296   : > { %v1202_v50 = vsel %vm1198_vm4, %v1194_v45, %v1200_v47 }
 0x297   : > { %v1203_v49 = vsel %vm1199_vm5, %v1196_v46, %v1201_v48 }
 0x298   : > { %1307 = vmatprep.mubr.f32.mxu1 %v1203_v49 }
 0x299   : > { %1308 = vmatmul.mubr.f32.vlgmr.msra.gmra.mrb[2].mxu1 %v1202_v50 }
 0x36c   : > { %v1548_v61 = vpop.f32.mrb[2].mxu1 }
 0x36d   : > { %v1549_v31 = vpop.f32.mrb[3].mxu1 }
 0x36e   : > { %v1550_v51 = vadd.f32 %v1549_v31, %v1548_v61 }
 0x370   : > { %v1310_v52 = vadd.f32 %v1550_v51, %v1510_v16 }
 0x372   : > { %v1313_v53 = vsub.f32 0.0, %v1310_v52 }
 0x374   : > { %v1314_v54 = vmul.f32 1.442695, %v1313_v53 }
 0x376   : > { %1894 = vpow2.f32 %v1314_v54 }
 0x380   : > { %v1895_v55 = vpop.eup %1894 }
 0x381   : > { %v1316_v56 = vadd.f32 1.0, %v1895_v55 }
 0x383   : > { %1896 = vrcp.f32 %v1316_v56 }
 0x38d   : > { %v1897_v57 = vpop.eup %1896 }
 0x38e   : > { %1319 = vst [vmem:[%s2391_s7] sm:$0xff] %v1897_v57 }
 0x38f PF: > { %s21_s29 = sadd.s32 1, %s2038_s29   ;;  %s2404_s24 = smov %s2022_s25 }
 0x390   : > { %p18_p4 = scmp.ge.s32.totalorder %s21_s29, 5   ;;  %s2405_s25 = smov %s2026_s26 }
 0x391   : > { %s2406_s26 = smov %s2207_s22  ;;  %s2407_s27 = smov %s2034_s28 }
 0x392   : > { %s2408_s28 = smov %s2410_s17  ;;  %20 = sbr.rel (!%p18_p4) target bundleno = 5 (0x5), region = 107 }
 0x399   :  { %1339 = vsyncpa [#allocation4], 1 }
 0x39a   :  { %1341 = vsyncpa [#allocation4 + $0x1], 1 }
 0x39b   :  { %1342 = vsyncpa [#allocation6], 1 }

</bundles_post_ra>
